<compile_context>
chip_gen: v7x
topology: tpu7x:2x2x1
jax: 0.10.0
libtpu: 0.0.40
codegen_flags: <defaults>
</compile_context>

<pallas_src>
import functools

import jax
import jax.numpy as jnp
from jax import lax
from jax.experimental import pallas as pl
from jax.experimental.pallas import tpu as pltpu


def _pool_classify_kernel(x_ref, w_ref, b_ref, o_ref, acc_ref, *, hw, ts):
    """Fused global-avg-pool (tiled over spatial lanes) + linear classifier.

    x_ref:   (tb, C, ts)   native-layout feature tile (spatial on lanes)
    w_ref:   (C, n_pad)    pre-transposed, lane-padded classifier weight (bf16)
    b_ref:   (1, n_pad)    lane-padded bias (f32)
    o_ref:   (tb, n_pad)   logits (f32), written on the last spatial step
    acc_ref: (tb, C)       f32 running spatial sum (VMEM scratch)
    """
    k = pl.program_id(1)
    last = pl.num_programs(1) - 1

    @pl.when(k == 0)
    def _init():
        acc_ref[...] = jnp.zeros_like(acc_ref)

    def _accumulate(mask_tail):
        # Upcast per tile; accumulate in f32 (narrow dtype only on the wire).
        x_tile = x_ref[...].astype(jnp.float32)                 # (tb, C, ts)
        if mask_tail:
            # Zero the padded spatial tail so it does not contaminate the sum;
            # the divisor stays the exact H*W.  2-D-ish iota, broadcast once.
            col = lax.broadcasted_iota(jnp.int32, (1, 1, ts), 2)
            x_tile = jnp.where(col < hw - k * ts, x_tile, 0.0)
        # Lane-direction (XLU) reduce; result (tb, C) is lane-dense in C.
        acc_ref[...] += jnp.sum(x_tile, axis=-1)

    if hw % ts == 0:
        # Every spatial tile is full: no masking anywhere.
        _accumulate(mask_tail=False)
    else:
        @pl.when(k < last)
        def _full_step():
            _accumulate(mask_tail=False)

        @pl.when(k == last)
        def _tail_step():
            _accumulate(mask_tail=True)

    @pl.when(k == last)
    def _finalize():
        pooled = acc_ref[...] * (1.0 / hw)                      # AdaptiveAvgPool2d(1)
        # TODO(synk): Dropout is identity in eval mode; nothing to emit here.
        o_ref[...] = (
            jnp.dot(pooled.astype(w_ref.dtype), w_ref[...],
                    preferred_element_type=jnp.float32)
            + b_ref[...]
        ).astype(o_ref.dtype)


def _vmem_limit_bytes():
    """Scoped-VMEM limit with ~25% headroom over the queried capacity."""
    phys = 64 * 1024 * 1024                       # v7x per-TC physical (most conservative)
    try:
        info = pltpu.get_tpu_info()
        phys = int(getattr(info, "vmem_capacity_bytes", phys)) or phys
    except Exception:
        pass
    return (phys * 3) // 4                        # v5e/v6e -> 96 MiB, v7x -> 48 MiB


def _choose_batch_tile(b):
    """Batch tile: single tile for tiny B, else >=2 tiles (v7x megacore) capped
    at 64 rows and kept a multiple of 8 for the (tb, n_pad) output block."""
    if b <= 8:
        # TODO(synk): for B <= 8 on v7x the second TensorCore idles; a spatial
        # split across a leading parallel axis with a cross-core combine would
        # recover it, at the cost of a second (tiny) combine pass.
        return b
    tb = -(-((b + 1) // 2) // 8) * 8              # ceil(B/2) rounded up to mult of 8
    return min(64, tb)


def _choose_spatial_tile(hw, tb, c, itemsize, budget_bytes, max_spatial_tile=None):
    """Largest lane-aligned (multiple-of-128) spatial tile whose double-buffered
    x block fits `budget_bytes`; prefers a divisor of H*W to avoid tail masks."""
    cap = hw if max_spatial_tile is None else min(hw, max_spatial_tile)
    per_row_bytes = max(1, 2 * tb * c * itemsize)       # double-buffered x tile
    if cap >= hw and hw * per_row_bytes <= budget_bytes:
        return hw                                        # whole spatial extent in one tile
    if hw <= 128:
        return hw                                        # lane dim must be 128-aligned or full
    ts = min(cap, budget_bytes // per_row_bytes)
    ts = max(128, (ts // 128) * 128)
    ts = min(ts, hw)
    for cand in range(ts, 127, -128):                    # prefer a divisor of H*W
        if hw % cand == 0:
            return cand
    return ts


def model_wrapper_forward(x_nchw, weight, bias, *, max_spatial_tile=None,
                          weight_dtype=jnp.bfloat16):
    """x_nchw: (B, C, H, W); weight: (num_classes, C); bias: (num_classes,)."""
    B, C, H, W = x_nchw.shape
    num_classes = weight.shape[0]
    HW = H * W

    # Native layout for the kernel: (B, C, HW) is a pure reshape (no transpose,
    # no extra HBM traffic).
    # TODO(synk): get_features() is abstract in ModelWrapperBase; the backbone
    # is treated as identity (the base class's own forward is pool + linear).
    x_flat = x_nchw.reshape(B, C, HW)

    # Pre-transpose weight to (C, N) and pad N to a lane-dense multiple of 128
    # so the finalize store is an unmasked vst; slice back after the call.
    # Weight is stored bf16 (halves its resident VMEM); bias stays f32.
    n_pad = ((num_classes + 127) // 128) * 128
    w_t = jnp.zeros((C, n_pad), dtype=weight_dtype)
    w_t = w_t.at[:, :num_classes].set(weight.T.astype(weight_dtype))
    b_2d = jnp.zeros((1, n_pad), dtype=jnp.float32)
    b_2d = b_2d.at[:, :num_classes].set(bias.astype(jnp.float32))

    tb = _choose_batch_tile(B)

    # VMEM budget for the streamed x tile: limit minus everything else that is
    # resident (double-buffered weight/bias/output + f32 accumulator scratch).
    vmem_limit = _vmem_limit_bytes()
    x_itemsize = jnp.dtype(x_flat.dtype).itemsize
    fixed_bytes = (2 * C * n_pad * jnp.dtype(weight_dtype).itemsize   # weight x2 bufs
                   + 2 * 1 * n_pad * 4                                # bias   x2 bufs
                   + 2 * tb * n_pad * 4                               # output x2 bufs
                   + tb * C * 4)                                      # acc scratch
    min_x_bytes = 2 * tb * C * min(HW, 128) * x_itemsize
    x_budget = max(min_x_bytes, vmem_limit - fixed_bytes)

    ts = _choose_spatial_tile(HW, tb, C, x_itemsize, x_budget, max_spatial_tile)
    grid = (pl.cdiv(B, tb), pl.cdiv(HW, ts))

    kernel = functools.partial(_pool_classify_kernel, hw=HW, ts=ts)

    out_padded = pl.pallas_call(
        kernel,
        out_shape=jax.ShapeDtypeStruct((B, n_pad), jnp.float32),
        grid_spec=pltpu.PrefetchScalarGridSpec(
            num_scalar_prefetch=0,
            grid=grid,
            in_specs=[
                # x streams over (batch, spatial); default double-buffering
                # (depth 2 is already back-to-back DMA for this tiny compute).
                pl.BlockSpec((tb, C, ts), lambda i, k: (i, 0, k)),
                # Weight / bias are grid-invariant -> fetched once, resident.
                pl.BlockSpec((C, n_pad), lambda i, k: (0, 0)),
                pl.BlockSpec((1, n_pad), lambda i, k: (0, 0)),
            ],
            out_specs=pl.BlockSpec((tb, n_pad), lambda i, k: (i, 0)),
            scratch_shapes=[pltpu.VMEM((tb, C), jnp.float32)],
        ),
        compiler_params=pltpu.CompilerParams(
            dimension_semantics=("parallel", "arbitrary"),
            vmem_limit_bytes=vmem_limit,
        ),
    )(x_flat, w_t, b_2d)

    return out_padded[:, :num_classes]


if __name__ == "__main__":
    # Small, deterministic example shapes.
    B, C, H, W = 2, 4, 16, 16
    num_classes = 10

    key = jax.random.PRNGKey(0)
    kx, kw, kb = jax.random.split(key, 3)

    x = jax.random.normal(kx, (B, C, H, W), dtype=jnp.float32)

    # nn.Linear(C, num_classes) default init: U(-1/sqrt(C), 1/sqrt(C))
    bound = 1.0 / jnp.sqrt(jnp.float32(C))
    weight = jax.random.uniform(
        kw, (num_classes, C), dtype=jnp.float32, minval=-bound, maxval=bound
    )
    bias = jax.random.uniform(
        kb, (num_classes,), dtype=jnp.float32, minval=-bound, maxval=bound
    )

    # Cap the spatial (lane) tile at 128 so the demo exercises the multi-step
    # accumulate / finalize path (H*W = 256 -> 2 spatial grid steps).
    out = model_wrapper_forward(x, weight, bias, max_spatial_tile=128)
    out = jax.block_until_ready(out)

    # Reference check in plain JAX (f32 everywhere).  The kernel stores the
    # classifier weight in bf16 (perf: halves its resident VMEM), so compare
    # at bf16-level tolerance.
    ref = x.mean(axis=(2, 3)) @ weight.T + bias
    assert out.shape == (B, num_classes)
    assert jnp.allclose(out, ref, atol=2e-2, rtol=2e-2), float(jnp.max(jnp.abs(out - ref)))

    print("KERNEL_OK")
</pallas_src>

<mosaic_0001>
module attributes {stable_mosaic.version = 11 : i64} {
  func.func @_pool_classify_kernel(%arg0: i32, %arg1: i32, %arg2: memref<2x4x128xf32, #tpu.memory_space<vmem>>, %arg3: memref<4x128xbf16, #tpu.memory_space<vmem>>, %arg4: memref<1x128xf32, #tpu.memory_space<vmem>>, %arg5: memref<2x128xf32, #tpu.memory_space<vmem>>, %arg6: memref<2x4xf32, #tpu.memory_space<vmem>>) attributes {dimension_semantics = [#tpu.dimension_semantics<parallel>, #tpu.dimension_semantics<arbitrary>], iteration_bounds = array<i64: 1, 2>, scalar_prefetch = 0 : i64, scratch_operands = 1 : i64, tpu.core_type = #tpu.core_type<tc>, window_params = [{transform_indices = @transform_0, window_bounds = array<i64: 2, 4, 128>}, {pipeline_mode = #tpu.pipeline_mode<synchronous>, transform_indices = @transform_1, window_bounds = array<i64: 4, 128>}, {pipeline_mode = #tpu.pipeline_mode<synchronous>, transform_indices = @transform_2, window_bounds = array<i64: 1, 128>}, {transform_indices = @transform_3, window_bounds = array<i64: 2, 128>}]} {
    %c0_i32 = arith.constant 0 : i32
    %0 = arith.cmpi eq, %arg1, %c0_i32 : i32
    %1 = arith.extui %0 : i1 to i32
    %c0_i32_0 = arith.constant 0 : i32
    %2 = arith.cmpi ne, %1, %c0_i32_0 : i32
    scf.if %2 {
      %cst_8 = arith.constant 0.000000e+00 : f32
      %11 = vector.broadcast %cst_8 : f32 to vector<2x4xf32>
      %c0_9 = arith.constant 0 : index
      %c0_10 = arith.constant 0 : index
      %12 = vector.load %arg6[%c0_9, %c0_10] : memref<2x4xf32, #tpu.memory_space<vmem>>, vector<2x4xf32>
      tpu.vector_store %arg6[%c0_9, %c0_10], %11 {strides = array<i32>} : memref<2x4xf32, #tpu.memory_space<vmem>>, vector<2x4xf32>,
    } else {
    }
    %c0 = arith.constant 0 : index
    %c0_1 = arith.constant 0 : index
    %c0_2 = arith.constant 0 : index
    %3 = vector.load %arg2[%c0, %c0_1, %c0_2] : memref<2x4x128xf32, #tpu.memory_space<vmem>>, vector<2x4x128xf32>
    %c0_3 = arith.constant 0 : index
    %c0_4 = arith.constant 0 : index
    %4 = vector.load %arg6[%c0_3, %c0_4] : memref<2x4xf32, #tpu.memory_space<vmem>>, vector<2x4xf32>
    %cst = arith.constant dense<0.000000e+00> : vector<2x4xf32>
    %5 = vector.multi_reduction <add>, %3, %cst [2] : vector<2x4x128xf32> to vector<2x4xf32>
    %6 = arith.addf %4, %5 : vector<2x4xf32>
    %c0_5 = arith.constant 0 : index
    %c0_6 = arith.constant 0 : index
    %7 = vector.load %arg6[%c0_5, %c0_6] : memref<2x4xf32, #tpu.memory_space<vmem>>, vector<2x4xf32>
    tpu.vector_store %arg6[%c0_5, %c0_6], %6 {strides = array<i32>} : memref<2x4xf32, #tpu.memory_space<vmem>>, vector<2x4xf32>,
    %c1_i32 = arith.constant 1 : i32
    %8 = arith.cmpi eq, %arg1, %c1_i32 : i32
    %9 = arith.extui %8 : i1 to i32
    %c0_i32_7 = arith.constant 0 : i32
    %10 = arith.cmpi ne, %9, %c0_i32_7 : i32
    scf.if %10 {
      %c0_8 = arith.constant 0 : index
      %c0_9 = arith.constant 0 : index
      %11 = vector.load %arg6[%c0_8, %c0_9] : memref<2x4xf32, #tpu.memory_space<vmem>>, vector<2x4xf32>
      %cst_10 = arith.constant 3.906250e-03 : f32
      %12 = vector.broadcast %cst_10 : f32 to vector<2x4xf32>
      %13 = arith.mulf %11, %12 : vector<2x4xf32>
      %14 = arith.truncf %13 : vector<2x4xf32> to vector<2x4xbf16>
      %c0_11 = arith.constant 0 : index
      %c0_12 = arith.constant 0 : index
      %15 = vector.load %arg3[%c0_11, %c0_12] : memref<4x128xbf16, #tpu.memory_space<vmem>>, vector<4x128xbf16>
      %cst_13 = arith.constant dense<0.000000e+00> : vector<2x128xf32>
      %16 = tpu.matmul %14, %15, %cst_13 {dimension_numbers = #tpu.dot_dimension_numbers<[1], [0], [0], [1], [0, 0, 1, 1], [], []>} : vector<2x4xbf16>, vector<4x128xbf16>, vector<2x128xf32> -> vector<2x128xf32>
      %c0_14 = arith.constant 0 : index
      %c0_15 = arith.constant 0 : index
      %17 = vector.load %arg4[%c0_14, %c0_15] : memref<1x128xf32, #tpu.memory_space<vmem>>, vector<1x128xf32>
      %18 = vector.broadcast %17 : vector<1x128xf32> to vector<2x128xf32>
      %19 = arith.addf %16, %18 : vector<2x128xf32>
      %c0_16 = arith.constant 0 : index
      %c0_17 = arith.constant 0 : index
      %20 = vector.load %arg5[%c0_16, %c0_17] : memref<2x128xf32, #tpu.memory_space<vmem>>, vector<2x128xf32>
      tpu.vector_store %arg5[%c0_16, %c0_17], %19 {strides = array<i32>} : memref<2x128xf32, #tpu.memory_space<vmem>>, vector<2x128xf32>,
    } else {
    }
    return
  }
  func.func @transform_0(%arg0: i32, %arg1: i32) -> (i32, i32, i32) {
    %c0_i32 = arith.constant 0 : i32
    %c0_i32_0 = arith.constant 0 : i32
    return %arg0, %c0_i32, %arg1 : i32, i32, i32
  }
  func.func @transform_1(%arg0: i32, %arg1: i32) -> (i32, i32) {
    %c0_i32 = arith.constant 0 : i32
    %c0_i32_0 = arith.constant 0 : i32
    %c0_i32_1 = arith.constant 0 : i32
    return %c0_i32, %c0_i32_0 : i32, i32
  }
  func.func @transform_2(%arg0: i32, %arg1: i32) -> (i32, i32) {
    %c0_i32 = arith.constant 0 : i32
    %c0_i32_0 = arith.constant 0 : i32
    %c0_i32_1 = arith.constant 0 : i32
    return %c0_i32, %c0_i32_0 : i32, i32
  }
  func.func @transform_3(%arg0: i32, %arg1: i32) -> (i32, i32) {
    %c0_i32 = arith.constant 0 : i32
    %c0_i32_0 = arith.constant 0 : i32
    return %arg0, %c0_i32 : i32, i32
  }
}

</mosaic_0001>

<bundles_post_ra>
// kernel: tpu_custom_call.1
= control target key start
LH: loop header
LB: loop body
LE: loop exit
PB: predicated region body
PF: predicated region fallthrough
CT: control target
= control target key end

     0   :  { %8 = vsyncpa [#allocation4], 0  ;;  %s760_s0 = inlined_call_operand.hbm [shape: f32[2,4,256], index: 0, kind: input, shape index: {}]   ;;  %s761_s1 = inlined_call_operand.vmem [shape: bf16[4,128], index: 1, kind: input, shape index: {}]   ;;  %s762_s2 = inlined_call_operand.vmem [shape: f32[1,128], index: 2, kind: input, shape index: {}]   ;;  %s763_s3 = inlined_call_operand.hbm [shape: f32[2,128], index: 3, kind: output, shape index: {}]  }
   0x1   :  { %10 = vsyncpa [#allocation4 + $0x1], 0 }
   0x2   :  { %11 = vsyncpa [#allocation5], 0  ;;  %s601_s12 = smov 0   ;;  %s603_s13 = smov 0  }
   0x3   :  { %s605_s14 = smov 0   ;;  %s607_s15 = smov 0  }
   0x4   :  { %s609_s16 = smov 0   ;;  %s611_s17 = smov 0  }
   0x5 LB: > { %s370_s18 = sadd.s32 4294967295, %s571_s17   ;;  %s26_s19 = sadd.s32 1, %s567_s16  ;;  %s571_s17 = sphi %s611_s17, %s17_s17   ;;  %s567_s16 = sphi %s609_s16, %s773_s16   ;;  %s563_s15 = sphi %s607_s15, %s772_s15   ;;  %s559_s14 = sphi %s605_s14, %s771_s14   ;;  %s555_s13 = sphi %s603_s13, %s770_s13   ;;  %s551_s12 = sphi %s601_s12, %s769_s12  }
   0x6   : > { %p27_p0 = scmp.ge.s32.totalorder %s26_s19, 2  ;;  %s38_s20 = sadd.s32 1, %s559_s14 }
   0x7   : > { %p45_p1 = scmp.ne.s32.totalorder %s559_s14, %s555_s13  ;;  %p46_p2 = scmp.eq.s32.totalorder %s571_s17, 0 }
   0x8   : > { %s775_s19 = smov (%p27_p0, %s26_s19), 0  ;;  %p51_p4 = scmp.ne.s32.totalorder %s555_s13, %s551_s12 }
   0x9   : > { %p637_p3 = por %p46_p2, %p45_p1  ;;  %s34_s22 = ssub.s32 %s567_s16, %s775_s19 }
   0xa   : > { %p52_p5 = scmp.eq.s32.totalorder %s370_s18, 0  ;;  %p36_p6 = scmp.eq.s32.totalorder %s34_s22, 0 }
   0xb   : > { %p403_p8 = scmp.lt.s32.totalorder %s571_s17, 2  ;;  %s149_s25 = sand.u32 1, %s559_s14  }
   0xc   : > { %p646_p7 = por %p52_p5, %p51_p4  ;;  %s374_s26 = sshll.u32 %s567_s16, 6 }
   0xd   : > { %s652_s24 = scalar_select %p36_p6, %s559_s14, %s38_s20  }
   0xe   : > { %s373_s27 = sshll.u32 %s149_s25, 3  ;;  %s659_s30 = scalar_lea.hbm %s760_s0, %s374_s26 }
   0xf   : > { %s153_s4 = scalar_lea.vmem [#allocation3], %s373_s27  ;;  %p663_p9 = pnand %p403_p8, %p637_p3 }
  0x10   : > { %s162_s5 = sshll.u32 %s153_s4, 4  ;;  %s670_s7 = scalar_lea.sflag [#allocation4], %s149_s25  ;;  %s667_s5 = int_to_ptr.vmem [resolvable:$true] %s162_s5 }
  0x11   : > { %s461_s8 = scalar_lea.hbm %s659_s30, 128  ;;  %p463_p12 = pneg %p663_p9 }
  0x12   : > { %p462_p11 = scmp.ne.s32.totalorder %s659_s30, %s461_s8  ;;  %s466_s11 = scalar_lea.hbm %s760_s0, 256 }
  0x13   : > { %p467_p1 = scmp.lt.u32.totalorder %s659_s30, %s760_s0  ;;  %p468_p2 = scmp.lt.u32.totalorder %s466_s11, %s461_s8 }
  0x14   : > { %p464_p13 = pnand %p463_p12, %p462_p11  ;;  %p470_p4 = scmp.lt.u32.totalorder %s461_s8, %s659_s30 }
  0x15   : > { %p469_p3 = por %p468_p2, %p467_p1 }
  0x16   : > { %p465_p0 = pneg %p464_p13 }
  0x17   : > { %p471_p5 = por %p470_p4, %p469_p3 }
  0x19   : > { %p472_p6 = pnand %p471_p5, %p465_p0 }
  0x1b   : > { %475 = shalt.err (!%p472_p6)
}
  0x1c   : > { %s476_s21 = scalar_lea.vmem %s667_s5, 128  ;;  %s573_s22 = smov [#allocation3]  }
  0x1d   : > { %p477_p8 = scmp.ne.s32.totalorder %s667_s5, %s476_s21  ;;  %s481_s25 = sshll.u32 %s573_s22, 4  ;;  %s482_s25 = int_to_ptr.vmem [resolvable:$false] %s481_s25 }
  0x1e   : > { %s483_s26 = scalar_lea.vmem %s482_s25, 256  ;;  %p484_p10 = scmp.lt.s32.totalorder %s667_s5, %s482_s25 }
  0x1f   : > { %p479_p11 = pnand %p477_p8, %p463_p12  ;;  %p485_p1 = scmp.lt.s32.totalorder %s483_s26, %s476_s21 }
  0x21   : > { %p480_p13 = pneg %p479_p11  ;;  %p486_p2 = por %p485_p1, %p484_p10 }
  0x23   : > { %p487_p3 = pnand %p486_p2, %p480_p13 }
  0x25   : > { %490 = shalt.err (!%p487_p3)
}
  0x26   : > { %s574_s27 = smov 128   ;;  %s575_s28 = smov 64  }
  0x27   : > { %s576_s29 = smov 4   ;;  %p170_p12 = scmp.lt.s32.totalorder %s571_s17, 3 }
  0x28   : > { %402 = dma.hbm_to_vmem [thread:$0]  (!%p663_p9), %s659_s30, 128, %s667_s5, %s670_s7, %s574_s27, %s575_s28, %s576_s29  }
  0x29   : > { %p767_p0 = scmp.ge.s32.totalorder %s571_s17, 1 }
  0x2b   : > { %p171_p4 = pnand %p767_p0, %p170_p12 }
  0x2c   : > { %s176_s4 = sand.u32 (!%p171_p4), 1, %s555_s13  }
  0x2d   : > { %174 = sbr.rel (%p171_p4) target bundleno = 467 (0x1d3), region = 32  ;;  %s376_s8 = sshll.u32 (!%p171_p4), %s176_s4, 3 }
  0x2e   : > { %s177_s9 = scalar_lea.sflag (!%p171_p4), [#allocation4], %s176_s4  ;;  %s180_s10 = scalar_lea.vmem (!%p171_p4), [#allocation3], %s376_s8 }
  0x34   : > { %542 = dma.done.wait (%p646_p7), %s177_s9, 128  }
  0x35   : > { %544 = vsyncadd (%p646_p7), %s177_s9, 4294967168  ;;  %p377_p10 = scmp.ne.s32.totalorder %s563_s15, 0 }
  0x36   : > { %vm204_vm0 = vcmask (!%p377_p10), 25600   ;;  %v577_v0 = vmov (!%p377_p10), 0.0  }
  0x37   : > { %203 = sbr.rel (%p377_p10) target bundleno = 62 (0x3e), region = 40  ;;  %205 = vst.msk [vmem:[#allocation2] sm:$0x3] (!%p377_p10), %vm204_vm0, %v577_v0 }
  0x3e PF: > { %v206_v1 = vld [vmem:[%s180_s10] sm:$0xf]  ;;  %vm209_vm1 = vcmask 1043456   ;;  %v207_v2 = vld [vmem:[%s180_s10 + $0x4] sm:$0xf]  ;;  %v218_v5 = vlaneseq  ;;  %vm228_vm2 = vcmask 1041409  }
  0x3f   : > { %v210_v3 = vsel %vm209_vm1, %v206_v1, 0.0  ;;  %v213_v4 = vsel %vm209_vm1, %v207_v2, 0.0  ;;  %v208_v12 = vld [vmem:[#allocation2] sm:$0x3]  ;;  %vm232_vm3 = vcmask 25600   ;;  %p378_p7 = scmp.ne.s32.totalorder %s563_s15, 1 }
  0x40   : > { %211 = vadd.xlane.f32.xlu0 %v210_v3  ;;  %v219_v6 = vand.u32 127, %v218_v5  ;;  %v221_v7 = vshrl.u32 %v218_v5, 7  ;;  %v241_v16 = vld [vmem:[%s761_s1] sm:$0x3] (!%p378_p7)  ;;  %vm253_vm4 = vcmask (!%p378_p7), 1041408   ;;  %v578_v17 = vmov (!%p378_p7), 0.0  }
  0x41   : > { %387 = vmatprep.subr.bf16.mxu0 (!%p378_p7), %v578_v17  ;;  %v255_v18 = vsel (!%p378_p7), %vm253_vm4, %v241_v16, 0  ;;  %vm579_vm5 = vmmov (!%p378_p7), 0   ;;  %vm249_vm6 = vcmask (!%p378_p7), 31744   ;;  %v379_v22 = vld [vmem:[%s762_s2] ss:$0 sm:$0xff] (!%p378_p7) }
  0x42   : > { %v222_v9 = vsub.s32 %v219_v6, %v221_v7  ;;  %389 = vmatprep.mubr.msk.bf16.mxu0 (!%p378_p7), %vm579_vm5, %v578_v17  ;;  %388 = vmatpush3.bf16.msra.mxu0 (!%p378_p7), %v255_v18 }
  0x44   : > { %214 = vadd.xlane.f32.xlu0 %v213_v4 }
  0xcd   : > { %v212_v8 = vpop.xlane.xlu0 %211 }
  0xce   : > { %v223_v11 = vrot.slane %v212_v8, %v222_v9 }
  0xd1   : > { %v215_v10 = vpop.xlane.xlu0 %214  ;;  %237 = sbr.rel (%p378_p7) target bundleno = 442 (0x1ba), region = 44 }
  0xd2   : > { %v227_v13 = vrot.slane %v215_v10, %v222_v9 }
  0xd4   : > { %v229_v14 = vsel %vm228_vm2, %v227_v13, %v223_v11 }
  0xd5   : > { %v231_v15 = vadd.f32 %v229_v14, %v208_v12 }
  0xd7   : > { %233 = vst.msk [vmem:[#allocation2] sm:$0x3] %vm232_vm3, %v231_v15 }
  0xde   : > { %v238_v19 = vld [vmem:[#allocation2] sm:$0x3] }
  0xdf   : > { %v239_v20 = vmul.f32 0.00390625, %v238_v19 }
  0xe1   : > { %v240_v21 = vpack.c.bf16 %v239_v20, %v239_v20 }
  0xe3   : > { %390 = vmatmul.mubr.msk.bf16.vlgmr.msra.gmra.mrb[0].mxu0 %vm249_vm6, %v240_v21 }
 0x1b6   : > { %v291_v23 = vpop.f32.mrb[0].mxu0 }
 0x1b7   : > { %v292_v24 = vadd.f32 %v379_v22, %v291_v23  ;;  %v391_v25 = vpop.f32.mrb[1].mxu0 }
 0x1b8   : > { %v294_v26 = vpop.f32.mrb[2].mxu0 }
 0x1b9   : > { %297 = vst [vmem:[#allocation6] sm:$0x3] %v292_v24  ;;  %v392_v27 = vpop.f32.mrb[3].mxu0 }
 0x1ba PF: > { %p716_p9 = scmp.eq.s32.totalorder %s370_s18, 1  ;;  %s580_s7 = smov [#allocation6]  }
 0x1bb   : > { %s307_s11 = sshll.u32 %s580_s7, 4  ;;  %s308_s11 = int_to_ptr.vmem [resolvable:$true] %s307_s11 }
 0x1bc   : > { %s491_s12 = scalar_lea.vmem %s308_s11, 32  ;;  %p498_p11 = scmp.lt.s32.totalorder %s308_s11, %s308_s11 }
 0x1bd   : > { %p492_p5 = scmp.ne.s32.totalorder %s308_s11, %s491_s12  ;;  %p499_p13 = scmp.lt.s32.totalorder %s491_s12, %s491_s12 }
 0x1bf   : > { %p493_p6 = pnand %p492_p5, %p716_p9  ;;  %p500_p1 = por %p499_p13, %p498_p11 }
 0x1c1   : > { %p494_p8 = pneg %p493_p6 }
 0x1c3   : > { %p501_p2 = pnand %p500_p1, %p494_p8 }
 0x1c5   : > { %504 = shalt.err (!%p501_p2)
}
 0x1c6   : > { %s505_s18 = scalar_lea.hbm %s763_s3, 32 }
 0x1c7   : > { %p506_p3 = scmp.ne.s32.totalorder %s763_s3, %s505_s18  ;;  %p511_p4 = scmp.lt.u32.totalorder %s505_s18, %s763_s3 }
 0x1c9   : > { %p507_p12 = pnand %p506_p3, %p716_p9 }
 0x1cb   : > { %p508_p0 = pneg %p507_p12 }
 0x1cd   : > { %p513_p10 = pnand %p511_p4, %p508_p0 }
 0x1cf   : > { %516 = shalt.err (!%p513_p10)
}
 0x1d0   : > { %396 = dma.vmem_to_hbm [thread:$0]  (%p716_p9), %s308_s11, 32, %s763_s3, [#allocation5]  }
 0x1d1   : > { %546 = dma.done.wait (%p716_p9), [#allocation5], 32  }
 0x1d2   : > { %548 = vsyncadd (%p716_p9), [#allocation5], 4294967264 }
 0x1d3 PF: > { %s17_s17 = sadd.s32 1, %s571_s17   ;;  %s769_s12 = smov %s555_s13 }
 0x1d4   : > { %p14_p7 = scmp.ge.s32.totalorder %s17_s17, 4   ;;  %s770_s13 = smov %s559_s14 }
 0x1d5   : > { %s771_s14 = smov %s652_s24  ;;  %s772_s15 = smov %s567_s16 }
 0x1d6   : > { %s773_s16 = smov %s775_s19  ;;  %16 = sbr.rel (!%p14_p7) target bundleno = 5 (0x5), region = 78 }
 0x1dd   :  { %320 = vsyncpa [#allocation4], 1 }
 0x1de   :  { %322 = vsyncpa [#allocation4 + $0x1], 1 }
 0x1df   :  { %323 = vsyncpa [#allocation5], 1 }
 0x1e0   :  { %325 = vsyncpa [#allocation5 + $0x1], 1 }

</bundles_post_ra>
